<compile_context>
chip_gen: v7x
topology: tpu7x:2x2x1
jax: 0.10.0
libtpu: 0.0.40
codegen_flags: <defaults>
</compile_context>

<pallas_src>
import functools

import jax
import jax.numpy as jnp
from jax import lax
from jax.experimental import pallas as pl
from jax.experimental.pallas import tpu as pltpu

LN_EPS = 1e-5  # PyTorch nn.LayerNorm default


def _round_up(x, m):
    return ((x + m - 1) // m) * m


def _cast_if(a, dt):
    return a if a.dtype == dt else a.astype(dt)


def _pad2d_if(a, rows, cols):
    r, c = a.shape
    if r == rows and c == cols:
        return a
    return jnp.pad(a, ((0, rows - r), (0, cols - c)))


def _chip_defaults():
    """(default tm, vmem_limit_bytes, multi_core) per TPU generation."""
    kind = ""
    try:
        kind = jax.devices()[0].device_kind.lower()
    except Exception:
        pass
    if "v7" in kind:
        # 64 MiB/TC: keep the cap <=48 MiB, rely on bf16 activation I/O for headroom.
        return 512, 48 * 1024 * 1024, True
    if "v6" in kind:
        return 512, 100 * 1024 * 1024, False
    if "v5" in kind:
        return 512, 96 * 1024 * 1024, False
    return 512, 48 * 1024 * 1024, False  # conservative fallback


def ffn_kernel(x_ref, w1_ref, b1_ref, w2_ref, b2_ref, gamma_ref, beta_ref,
               o_ref, acc_ref, *, inv_d, n_pad, eps):
    # grid = (row tiles [parallel], d_ff chunks [arbitrary])
    c = pl.program_id(1)
    x = x_ref[...]                                   # [tm, Dp] bf16

    @pl.when(c == 0)
    def _init():
        # residual (upcast once) + second-conv bias; padded feature columns stay 0.
        acc_ref[...] = x.astype(jnp.float32) + b2_ref[...]

    # chunked FFN: relu(x @ W1[:, chunk] + b1[chunk]) @ W2[chunk, :]
    # bf16 operands on the MXU, f32 accumulation.
    h = jnp.dot(x, w1_ref[...], preferred_element_type=jnp.float32) + b1_ref[...]
    h = jnp.maximum(h, 0.0)
    acc_ref[...] += jnp.dot(h.astype(jnp.bfloat16), w2_ref[...],
                            preferred_element_type=jnp.float32)

    @pl.when(c == pl.num_programs(1) - 1)
    def _finalize():
        y = acc_ref[...]                             # [tm, Dp] f32
        # Two-pass LayerNorm stats. Padded columns of y are exactly zero; after
        # centering they equal -mean, so subtract n_pad * mean^2 to recover the
        # exact sum of squares over the real d_model columns.
        mean = jnp.sum(y, axis=-1, keepdims=True) * inv_d
        centered = y - mean
        sq = jnp.sum(centered * centered, axis=-1, keepdims=True)
        var = (sq - n_pad * mean * mean) * inv_d
        normed = centered * lax.rsqrt(var + eps)
        o_ref[...] = (normed * gamma_ref[...] + beta_ref[...]).astype(o_ref.dtype)


@functools.partial(jax.jit, static_argnames=("tm", "tf"))
def poswise_ffn(x, w1, b1, w2, b2, gamma, beta, *, tm=None, tf=512):
    """x: [B, S, d_model] -> [B, S, d_model].  W1: [d_model, d_ff], W2: [d_ff, d_model]."""
    B, S, d_model = x.shape
    d_ff = w1.shape[1]
    M = B * S

    tm_default, vmem_limit, multi_core = _chip_defaults()
    if tm is None:
        tm = tm_default

    # Tile sizes: large row tiles to feed the MXU, clamped for tiny test shapes.
    # Rows rounded to 16 (bf16 sublane packing).
    tm_eff = min(tm, _round_up(M, 16))
    tf_eff = min(tf, _round_up(d_ff, 128))

    if multi_core:
        # Best effort: make the row-tile count even so the "parallel" axis splits
        # evenly across v7x's two TensorCores.
        n_rows = -(-M // tm_eff)
        if n_rows > 1 and n_rows % 2 == 1:
            tm_eff = min(tm_eff, _round_up(-(-M // (n_rows + 1)), 16))

    Mp = _round_up(M, tm_eff)          # padded token rows
    Dp = _round_up(d_model, 128)       # lane-dense feature dim
    Fp = _round_up(d_ff, tf_eff)       # padded hidden dim (chunk multiple)

    out_dtype = x.dtype

    # Host-side prep, gated so aligned / pre-cast inputs are no-ops.
    x2d = _pad2d_if(_cast_if(x.reshape(M, d_model), jnp.bfloat16), Mp, Dp)
    w1p = _pad2d_if(_cast_if(w1, jnp.bfloat16), Dp, Fp)
    w2p = _pad2d_if(_cast_if(w2, jnp.bfloat16), Fp, Dp)
    b1p = _pad2d_if(_cast_if(b1, jnp.float32).reshape(1, d_ff), 1, Fp)
    b2p = _pad2d_if(_cast_if(b2, jnp.float32).reshape(1, d_model), 1, Dp)
    gp = _pad2d_if(_cast_if(gamma, jnp.float32).reshape(1, d_model), 1, Dp)
    bp = _pad2d_if(_cast_if(beta, jnp.float32).reshape(1, d_model), 1, Dp)

    n_row_tiles = Mp // tm_eff
    grid = (n_row_tiles, Fp // tf_eff)

    kernel = functools.partial(ffn_kernel,
                               inv_d=1.0 / float(d_model),
                               n_pad=float(Dp - d_model),
                               eps=LN_EPS)

    out_bytes = jnp.dtype(out_dtype).itemsize
    cost = pl.CostEstimate(
        flops=int(4 * Mp * Dp * Fp),                          # two matmuls
        transcendentals=int(Mp),                              # one rsqrt per row
        bytes_accessed=int(Mp * Dp * 2                        # x in (bf16)
                           + Mp * Dp * out_bytes              # output
                           + n_row_tiles * 2 * Dp * Fp * 2    # weights re-streamed per row tile
                           + (Fp + 3 * Dp) * 4),              # biases + gamma/beta
    )

    out2d = pl.pallas_call(
        kernel,
        out_shape=jax.ShapeDtypeStruct((Mp, Dp), out_dtype),
        grid_spec=pltpu.PrefetchScalarGridSpec(
            num_scalar_prefetch=0,
            grid=grid,
            in_specs=[
                pl.BlockSpec((tm_eff, Dp), lambda i, c: (i, 0)),   # x rows (bf16)
                pl.BlockSpec((Dp, tf_eff), lambda i, c: (0, c)),   # W1 chunk (bf16)
                pl.BlockSpec((1, tf_eff), lambda i, c: (0, c)),    # b1 chunk (f32)
                pl.BlockSpec((tf_eff, Dp), lambda i, c: (c, 0)),   # W2 chunk (bf16)
                pl.BlockSpec((1, Dp), lambda i, c: (0, 0)),        # b2
                pl.BlockSpec((1, Dp), lambda i, c: (0, 0)),        # gamma
                pl.BlockSpec((1, Dp), lambda i, c: (0, 0)),        # beta
            ],
            out_specs=pl.BlockSpec((tm_eff, Dp), lambda i, c: (i, 0)),
            scratch_shapes=[pltpu.VMEM((tm_eff, Dp), jnp.float32)],  # y accumulator
        ),
        compiler_params=pltpu.CompilerParams(
            dimension_semantics=("parallel", "arbitrary"),
            vmem_limit_bytes=vmem_limit,
        ),
        cost_estimate=cost,
    )(x2d, w1p, b1p, w2p, b2p, gp, bp)

    return out2d[:M, :d_model].reshape(B, S, d_model)


if __name__ == "__main__":
    # Small shapes consistent with the module: [batch, seq_len, d_model], d_ff = 2*d_model
    batch, seq_len, d_model, d_ff = 2, 8, 32, 64

    key = jax.random.PRNGKey(0)
    kx, k1, k2, kb1, kb2 = jax.random.split(key, 5)

    x = jax.random.normal(kx, (batch, seq_len, d_model), dtype=jnp.float32)

    # Conv1d weight [out, in, 1] is stored here as [in, out] (1x1 conv == matmul).
    w1 = jax.random.normal(k1, (d_model, d_ff), dtype=jnp.float32) * 0.05
    b1 = jax.random.normal(kb1, (d_ff,), dtype=jnp.float32) * 0.05
    w2 = jax.random.normal(k2, (d_ff, d_model), dtype=jnp.float32) * 0.05
    b2 = jax.random.normal(kb2, (d_model,), dtype=jnp.float32) * 0.05
    gamma = jnp.ones((d_model,), dtype=jnp.float32)   # LayerNorm weight
    beta = jnp.zeros((d_model,), dtype=jnp.float32)   # LayerNorm bias

    out = poswise_ffn(x, w1, b1, w2, b2, gamma, beta)
    jax.block_until_ready(out)

    # Reference 1: mirror kernel semantics (bf16 activations/weights on the MXU,
    # bf16 residual, f32 accumulation / LayerNorm).
    f32 = lambda a: a.astype(jnp.float32)
    xb = f32(x.astype(jnp.bfloat16))
    w1b, w2b = f32(w1.astype(jnp.bfloat16)), f32(w2.astype(jnp.bfloat16))
    h_ref = jnp.maximum(jnp.einsum("bsd,df->bsf", xb, w1b) + b1, 0.0)
    y_ref = jnp.einsum("bsf,fd->bsd", f32(h_ref.astype(jnp.bfloat16)), w2b) + b2 + xb
    mu = jnp.mean(y_ref, axis=-1, keepdims=True)
    var = jnp.mean((y_ref - mu) ** 2, axis=-1, keepdims=True)
    ref_bf16 = (y_ref - mu) / jnp.sqrt(var + LN_EPS) * gamma + beta
    assert jnp.allclose(out, ref_bf16, atol=2e-3, rtol=2e-3)

    # Reference 2: pure f32 module semantics (loose tolerance: bf16 activations/MXU).
    h_f = jnp.maximum(jnp.einsum("bsd,df->bsf", x, w1) + b1, 0.0)
    y_f = jnp.einsum("bsf,fd->bsd", h_f, w2) + b2 + x
    mu_f = jnp.mean(y_f, axis=-1, keepdims=True)
    var_f = jnp.mean((y_f - mu_f) ** 2, axis=-1, keepdims=True)
    ref_f32 = (y_f - mu_f) / jnp.sqrt(var_f + LN_EPS) * gamma + beta
    assert jnp.allclose(out, ref_f32, atol=3e-2, rtol=3e-2)

    print("KERNEL_OK")
</pallas_src>

<mosaic_0001>
module attributes {stable_mosaic.version = 11 : i64} {
  func.func @ffn_kernel(%arg0: i32, %arg1: i32, %arg2: memref<16x128xbf16, #tpu.memory_space<vmem>>, %arg3: memref<128x128xbf16, #tpu.memory_space<vmem>>, %arg4: memref<1x128xf32, #tpu.memory_space<vmem>>, %arg5: memref<128x128xbf16, #tpu.memory_space<vmem>>, %arg6: memref<1x128xf32, #tpu.memory_space<vmem>>, %arg7: memref<1x128xf32, #tpu.memory_space<vmem>>, %arg8: memref<1x128xf32, #tpu.memory_space<vmem>>, %arg9: memref<16x128xf32, #tpu.memory_space<vmem>>, %arg10: memref<16x128xf32, #tpu.memory_space<vmem>>) attributes {dimension_semantics = [#tpu.dimension_semantics<parallel>, #tpu.dimension_semantics<arbitrary>], iteration_bounds = array<i64: 1, 1>, scalar_prefetch = 0 : i64, scratch_operands = 1 : i64, tpu.core_type = #tpu.core_type<tc>, window_params = [{transform_indices = @transform_0, window_bounds = array<i64: 16, 128>}, {transform_indices = @transform_1, window_bounds = array<i64: 128, 128>}, {transform_indices = @transform_2, window_bounds = array<i64: 1, 128>}, {transform_indices = @transform_3, window_bounds = array<i64: 128, 128>}, {pipeline_mode = #tpu.pipeline_mode<synchronous>, transform_indices = @transform_4, window_bounds = array<i64: 1, 128>}, {pipeline_mode = #tpu.pipeline_mode<synchronous>, transform_indices = @transform_5, window_bounds = array<i64: 1, 128>}, {pipeline_mode = #tpu.pipeline_mode<synchronous>, transform_indices = @transform_6, window_bounds = array<i64: 1, 128>}, {transform_indices = @transform_7, window_bounds = array<i64: 16, 128>}]} {
    %c0 = arith.constant 0 : index
    %c0_0 = arith.constant 0 : index
    %0 = vector.load %arg2[%c0, %c0_0] : memref<16x128xbf16, #tpu.memory_space<vmem>>, vector<16x128xbf16>
    %c0_i32 = arith.constant 0 : i32
    %1 = arith.cmpi eq, %arg1, %c0_i32 : i32
    %2 = arith.extui %1 : i1 to i32
    %c0_i32_1 = arith.constant 0 : i32
    %3 = arith.cmpi ne, %2, %c0_i32_1 : i32
    scf.if %3 {
      %20 = arith.extf %0 : vector<16x128xbf16> to vector<16x128xf32>
      %c0_16 = arith.constant 0 : index
      %c0_17 = arith.constant 0 : index
      %21 = vector.load %arg6[%c0_16, %c0_17] : memref<1x128xf32, #tpu.memory_space<vmem>>, vector<1x128xf32>
      %22 = vector.broadcast %21 : vector<1x128xf32> to vector<16x128xf32>
      %23 = arith.addf %20, %22 : vector<16x128xf32>
      %c0_18 = arith.constant 0 : index
      %c0_19 = arith.constant 0 : index
      %24 = vector.load %arg10[%c0_18, %c0_19] : memref<16x128xf32, #tpu.memory_space<vmem>>, vector<16x128xf32>
      tpu.vector_store %arg10[%c0_18, %c0_19], %23 {strides = array<i32>} : memref<16x128xf32, #tpu.memory_space<vmem>>, vector<16x128xf32>,
    } else {
    }
    %c0_2 = arith.constant 0 : index
    %c0_3 = arith.constant 0 : index
    %4 = vector.load %arg3[%c0_2, %c0_3] : memref<128x128xbf16, #tpu.memory_space<vmem>>, vector<128x128xbf16>
    %cst = arith.constant dense<0.000000e+00> : vector<16x128xf32>
    %5 = tpu.matmul %0, %4, %cst {dimension_numbers = #tpu.dot_dimension_numbers<[1], [0], [0], [1], [0, 0, 1, 1], [], []>} : vector<16x128xbf16>, vector<128x128xbf16>, vector<16x128xf32> -> vector<16x128xf32>
    %c0_4 = arith.constant 0 : index
    %c0_5 = arith.constant 0 : index
    %6 = vector.load %arg4[%c0_4, %c0_5] : memref<1x128xf32, #tpu.memory_space<vmem>>, vector<1x128xf32>
    %7 = vector.broadcast %6 : vector<1x128xf32> to vector<16x128xf32>
    %8 = arith.addf %5, %7 : vector<16x128xf32>
    %cst_6 = arith.constant 0.000000e+00 : f32
    %9 = vector.broadcast %cst_6 : f32 to vector<16x128xf32>
    %10 = arith.maximumf %8, %9 : vector<16x128xf32>
    %c0_7 = arith.constant 0 : index
    %c0_8 = arith.constant 0 : index
    %11 = vector.load %arg10[%c0_7, %c0_8] : memref<16x128xf32, #tpu.memory_space<vmem>>, vector<16x128xf32>
    %12 = arith.truncf %10 : vector<16x128xf32> to vector<16x128xbf16>
    %c0_9 = arith.constant 0 : index
    %c0_10 = arith.constant 0 : index
    %13 = vector.load %arg5[%c0_9, %c0_10] : memref<128x128xbf16, #tpu.memory_space<vmem>>, vector<128x128xbf16>
    %cst_11 = arith.constant dense<0.000000e+00> : vector<16x128xf32>
    %14 = tpu.matmul %12, %13, %cst_11 {dimension_numbers = #tpu.dot_dimension_numbers<[1], [0], [0], [1], [0, 0, 1, 1], [], []>} : vector<16x128xbf16>, vector<128x128xbf16>, vector<16x128xf32> -> vector<16x128xf32>
    %15 = arith.addf %11, %14 : vector<16x128xf32>
    %c0_12 = arith.constant 0 : index
    %c0_13 = arith.constant 0 : index
    %16 = vector.load %arg10[%c0_12, %c0_13] : memref<16x128xf32, #tpu.memory_space<vmem>>, vector<16x128xf32>
    tpu.vector_store %arg10[%c0_12, %c0_13], %15 {strides = array<i32>} : memref<16x128xf32, #tpu.memory_space<vmem>>, vector<16x128xf32>,
    %c0_i32_14 = arith.constant 0 : i32
    %17 = arith.cmpi eq, %arg1, %c0_i32_14 : i32
    %18 = arith.extui %17 : i1 to i32
    %c0_i32_15 = arith.constant 0 : i32
    %19 = arith.cmpi ne, %18, %c0_i32_15 : i32
    scf.if %19 {
      %c0_16 = arith.constant 0 : index
      %c0_17 = arith.constant 0 : index
      %20 = vector.load %arg10[%c0_16, %c0_17] : memref<16x128xf32, #tpu.memory_space<vmem>>, vector<16x128xf32>
      %cst_18 = arith.constant dense<0.000000e+00> : vector<16xf32>
      %21 = vector.multi_reduction <add>, %20, %cst_18 [1] : vector<16x128xf32> to vector<16xf32>
      %22 = vector.shape_cast %21 : vector<16xf32> to vector<16x1xf32>
      %cst_19 = arith.constant 3.125000e-02 : f32
      %23 = vector.broadcast %cst_19 : f32 to vector<16x1xf32>
      %24 = arith.mulf %22, %23 : vector<16x1xf32>
      %25 = vector.broadcast %24 : vector<16x1xf32> to vector<16x128xf32>
      %26 = arith.subf %20, %25 : vector<16x128xf32>
      %27 = arith.mulf %26, %26 : vector<16x128xf32>
      %cst_20 = arith.constant dense<0.000000e+00> : vector<16xf32>
      %28 = vector.multi_reduction <add>, %27, %cst_20 [1] : vector<16x128xf32> to vector<16xf32>
      %29 = vector.shape_cast %28 : vector<16xf32> to vector<16x1xf32>
      %cst_21 = arith.constant 9.600000e+01 : f32
      %30 = vector.broadcast %cst_21 : f32 to vector<16x1xf32>
      %31 = arith.mulf %30, %24 : vector<16x1xf32>
      %32 = arith.mulf %31, %24 : vector<16x1xf32>
      %33 = arith.subf %29, %32 : vector<16x1xf32>
      %cst_22 = arith.constant 3.125000e-02 : f32
      %34 = vector.broadcast %cst_22 : f32 to vector<16x1xf32>
      %35 = arith.mulf %33, %34 : vector<16x1xf32>
      %cst_23 = arith.constant 9.99999974E-6 : f32
      %36 = vector.broadcast %cst_23 : f32 to vector<16x1xf32>
      %37 = arith.addf %35, %36 : vector<16x1xf32>
      %38 = math.rsqrt %37 : vector<16x1xf32>
      %39 = vector.broadcast %38 : vector<16x1xf32> to vector<16x128xf32>
      %40 = arith.mulf %26, %39 : vector<16x128xf32>
      %c0_24 = arith.constant 0 : index
      %c0_25 = arith.constant 0 : index
      %41 = vector.load %arg7[%c0_24, %c0_25] : memref<1x128xf32, #tpu.memory_space<vmem>>, vector<1x128xf32>
      %42 = vector.broadcast %41 : vector<1x128xf32> to vector<16x128xf32>
      %43 = arith.mulf %40, %42 : vector<16x128xf32>
      %c0_26 = arith.constant 0 : index
      %c0_27 = arith.constant 0 : index
      %44 = vector.load %arg8[%c0_26, %c0_27] : memref<1x128xf32, #tpu.memory_space<vmem>>, vector<1x128xf32>
      %45 = vector.broadcast %44 : vector<1x128xf32> to vector<16x128xf32>
      %46 = arith.addf %43, %45 : vector<16x128xf32>
      %c0_28 = arith.constant 0 : index
      %c0_29 = arith.constant 0 : index
      %47 = vector.load %arg9[%c0_28, %c0_29] : memref<16x128xf32, #tpu.memory_space<vmem>>, vector<16x128xf32>
      tpu.vector_store %arg9[%c0_28, %c0_29], %46 {strides = array<i32>} : memref<16x128xf32, #tpu.memory_space<vmem>>, vector<16x128xf32>,
    } else {
    }
    return
  }
  func.func @transform_0(%arg0: i32, %arg1: i32) -> (i32, i32) {
    %c0_i32 = arith.constant 0 : i32
    %c0_i32_0 = arith.constant 0 : i32
    return %arg0, %c0_i32 : i32, i32
  }
  func.func @transform_1(%arg0: i32, %arg1: i32) -> (i32, i32) {
    %c0_i32 = arith.constant 0 : i32
    %c0_i32_0 = arith.constant 0 : i32
    return %c0_i32, %arg1 : i32, i32
  }
  func.func @transform_2(%arg0: i32, %arg1: i32) -> (i32, i32) {
    %c0_i32 = arith.constant 0 : i32
    %c0_i32_0 = arith.constant 0 : i32
    return %c0_i32, %arg1 : i32, i32
  }
  func.func @transform_3(%arg0: i32, %arg1: i32) -> (i32, i32) {
    %c0_i32 = arith.constant 0 : i32
    %c0_i32_0 = arith.constant 0 : i32
    return %arg1, %c0_i32 : i32, i32
  }
  func.func @transform_4(%arg0: i32, %arg1: i32) -> (i32, i32) {
    %c0_i32 = arith.constant 0 : i32
    %c0_i32_0 = arith.constant 0 : i32
    %c0_i32_1 = arith.constant 0 : i32
    return %c0_i32, %c0_i32_0 : i32, i32
  }
  func.func @transform_5(%arg0: i32, %arg1: i32) -> (i32, i32) {
    %c0_i32 = arith.constant 0 : i32
    %c0_i32_0 = arith.constant 0 : i32
    %c0_i32_1 = arith.constant 0 : i32
    return %c0_i32, %c0_i32_0 : i32, i32
  }
  func.func @transform_6(%arg0: i32, %arg1: i32) -> (i32, i32) {
    %c0_i32 = arith.constant 0 : i32
    %c0_i32_0 = arith.constant 0 : i32
    %c0_i32_1 = arith.constant 0 : i32
    return %c0_i32, %c0_i32_0 : i32, i32
  }
  func.func @transform_7(%arg0: i32, %arg1: i32) -> (i32, i32) {
    %c0_i32 = arith.constant 0 : i32
    %c0_i32_0 = arith.constant 0 : i32
    return %arg0, %c0_i32 : i32, i32
  }
}

</mosaic_0001>

<bundles_post_ra>
// kernel: poswise_ffn.1
= control target key start
LH: loop header
LB: loop body
LE: loop exit
PB: predicated region body
PF: predicated region fallthrough
CT: control target
= control target key end

     0   :  { %v438_v0 = vmov 0.0   ;;  %vm439_vm0 = vmmov 0   ;;  %s549_s1 = inlined_call_operand.vmem [shape: bf16[128,128], index: 1, kind: input, shape index: {}]   ;;  %s550_s3 = inlined_call_operand.vmem [shape: bf16[128,128], index: 3, kind: input, shape index: {}]   ;;  %s551_s0 = inlined_call_operand.vmem [shape: bf16[16,128], index: 0, kind: input, shape index: {}]   ;;  %s552_s2 = inlined_call_operand.vmem [shape: f32[1,128], index: 2, kind: input, shape index: {}]   ;;  %s553_s4 = inlined_call_operand.vmem [shape: f32[1,128], index: 4, kind: input, shape index: {}]   ;;  %s554_s5 = inlined_call_operand.vmem [shape: f32[1,128], index: 5, kind: input, shape index: {}]   ;;  %s555_s6 = inlined_call_operand.vmem [shape: f32[1,128], index: 6, kind: input, shape index: {}]   ;;  %s556_s7 = inlined_call_operand.vmem [shape: f32[16,128], index: 7, kind: output, shape index: {}]  }
   0x1   :  { %374 = vmatprep.subr.bf16.mxu0 %v438_v0  ;;  %v416_v1 = vld [vmem:[%s549_s1] sm:$0xff]   ;;  %390 = vmatprep.mubr.msk.bf16.mxu0 %vm439_vm0, %v438_v0  ;;  %v417_v2 = vld [vmem:[%s549_s1 + $0x8] sm:$0xff]   ;;  %v418_v3 = vld [vmem:[%s549_s1 + $0x10] sm:$0xff]  }
   0x2   :  { %394 = vmatprep.subr.bf16.mxu1 %v438_v0  ;;  %410 = vmatprep.mubr.msk.bf16.mxu1 %vm439_vm0, %v438_v0  ;;  %v425_v4 = vld [vmem:[%s550_s3] sm:$0xff]   ;;  %v419_v5 = vld [vmem:[%s549_s1 + $0x18] sm:$0xff]   ;;  %v426_v6 = vld [vmem:[%s550_s3 + $0x8] sm:$0xff]  }
   0x3   :  { %375 = vmatpush3.bf16.msra.mxu0 %v416_v1  ;;  %395 = vmatpush3.bf16.msra.mxu1 %v425_v4  ;;  %v420_v7 = vld [vmem:[%s549_s1 + $0x20] sm:$0xff]   ;;  %v427_v8 = vld [vmem:[%s550_s3 + $0x10] sm:$0xff]   ;;  %v421_v9 = vld [vmem:[%s549_s1 + $0x28] sm:$0xff]  }
   0x4   :  { %376 = vmatprep.subr.bf16.mxu0 %v438_v0  ;;  %396 = vmatprep.subr.bf16.mxu1 %v438_v0  ;;  %v428_v10 = vld [vmem:[%s550_s3 + $0x18] sm:$0xff]   ;;  %v422_v11 = vld [vmem:[%s549_s1 + $0x30] sm:$0xff]   ;;  %v429_v12 = vld [vmem:[%s550_s3 + $0x20] sm:$0xff]  }
   0x5   :  { %v423_v13 = vld [vmem:[%s549_s1 + $0x38] sm:$0xff]   ;;  %v27_v14 = vld [vmem:[%s551_s0] sm:$0xff]   ;;  %v430_v15 = vld [vmem:[%s550_s3 + $0x28] sm:$0xff]  }
   0x6   :  { %v431_v16 = vld [vmem:[%s550_s3 + $0x30] sm:$0xff]   ;;  %v432_v17 = vld [vmem:[%s550_s3 + $0x38] sm:$0xff]   ;;  %v336_v18 = vld [vmem:[%s552_s2] ss:$0 sm:$0xff]  ;;  %v33_v28 = vunpack.c.l.bf16 %v27_v14  ;;  %v34_v31 = vunpack.c.h.bf16 %v27_v14 }
   0x7   :  { %377 = vmatpush3.bf16.msra.mxu0 %v417_v2  ;;  %397 = vmatpush3.bf16.msra.mxu1 %v426_v6  ;;  %v335_v29 = vld [vmem:[%s553_s4] ss:$0 sm:$0xff] }
   0x8   :  { %378 = vmatprep.subr.bf16.mxu0 %v438_v0  ;;  %398 = vmatprep.subr.bf16.mxu1 %v438_v0  ;;  %v42_v30 = vadd.f32 %v335_v29, %v33_v28  ;;  %v43_v35 = vadd.f32 %v335_v29, %v34_v31  ;;  %v354_v60 = vld [vmem:[%s554_s5] ss:$0 sm:$0xff] }
   0x9   :  { %v355_v62 = vld [vmem:[%s555_s6] ss:$0 sm:$0xff] }
   0xb   :  { %379 = vmatpush3.bf16.msra.mxu0 %v418_v3  ;;  %399 = vmatpush3.bf16.msra.mxu1 %v427_v8 }
   0xc   :  { %380 = vmatprep.subr.bf16.mxu0 %v438_v0  ;;  %400 = vmatprep.subr.bf16.mxu1 %v438_v0 }
   0xf   :  { %381 = vmatpush3.bf16.msra.mxu0 %v419_v5  ;;  %401 = vmatpush3.bf16.msra.mxu1 %v428_v10 }
  0x10   :  { %382 = vmatprep.subr.bf16.mxu0 %v438_v0  ;;  %402 = vmatprep.subr.bf16.mxu1 %v438_v0 }
  0x13   :  { %383 = vmatpush3.bf16.msra.mxu0 %v420_v7  ;;  %403 = vmatpush3.bf16.msra.mxu1 %v429_v12 }
  0x14   :  { %384 = vmatprep.subr.bf16.mxu0 %v438_v0  ;;  %404 = vmatprep.subr.bf16.mxu1 %v438_v0 }
  0x17   :  { %385 = vmatpush3.bf16.msra.mxu0 %v421_v9  ;;  %405 = vmatpush3.bf16.msra.mxu1 %v430_v15 }
  0x18   :  { %386 = vmatprep.subr.bf16.mxu0 %v438_v0  ;;  %406 = vmatprep.subr.bf16.mxu1 %v438_v0 }
  0x1b   :  { %387 = vmatpush3.bf16.msra.mxu0 %v422_v11  ;;  %407 = vmatpush3.bf16.msra.mxu1 %v431_v16 }
  0x1c   :  { %388 = vmatprep.subr.bf16.mxu0 %v438_v0  ;;  %408 = vmatprep.subr.bf16.mxu1 %v438_v0 }
  0x1f   :  { %389 = vmatpush3.bf16.msra.mxu0 %v423_v13  ;;  %409 = vmatpush3.bf16.msra.mxu1 %v432_v17 }
  0x22   :  { %391 = vmatmul.mubr.bf16.vlgmr.msra.gmra.mrb[0].mxu0 %v27_v14 }
  0xf5   :  { %v157_v19 = vpop.f32.mrb[0].mxu0 }
  0xf6   :  { %v158_v20 = vadd.f32 %v336_v18, %v157_v19  ;;  %v392_v21 = vpop.f32.mrb[1].mxu0 }
  0xf7   :  { %v160_v22 = vpop.f32.mrb[2].mxu0 }
  0xf8   :  { %v161_v23 = vadd.f32 %v336_v18, %v160_v22  ;;  %v393_v24 = vpop.f32.mrb[3].mxu0  ;;  %v164_v25 = vmax.f32 %v158_v20, 0.0 }
  0xfa   :  { %v165_v26 = vmax.f32 %v161_v23, 0.0 }
  0xfc   :  { %v168_v27 = vpack.c.bf16 %v165_v26, %v164_v25 }
  0xfe   :  { %411 = vmatmul.mubr.bf16.vlgmr.msra.gmra.mrb[0].mxu1 %v168_v27 }
 0x1d1   :  { %v267_v32 = vpop.f32.mrb[0].mxu1 }
 0x1d2   :  { %v274_v33 = vadd.f32 %v267_v32, %v42_v30  ;;  %v412_v34 = vpop.f32.mrb[1].mxu1 }
 0x1d3   :  { %v270_v36 = vpop.f32.mrb[2].mxu1 }
 0x1d4   :  { %v413_v37 = vpop.f32.mrb[3].mxu1  ;;  %283 = vadd.xlane.f32.xlu0 %v274_v33  ;;  %v275_v38 = vadd.f32 %v270_v36, %v43_v35 }
 0x1d8   :  { %285 = vadd.xlane.f32.xlu0 %v275_v38 }
 0x261   :  { %v284_v39 = vpop.xlane.xlu0 %283 }
 0x262   :  { %v287_v40 = vmul.f32 0.03125, %v284_v39 }
 0x264   :  { %v289_v41 = vsub.f32 %v274_v33, %v287_v40  ;;  %v297_v47 = vmul.f32 96.0, %v287_v40 }
 0x265   :  { %v286_v42 = vpop.xlane.xlu0 %285 }
 0x266   :  { %v288_v43 = vmul.f32 0.03125, %v286_v42  ;;  %v291_v44 = vmul.f32 %v289_v41, %v289_v41  ;;  %v299_v49 = vmul.f32 %v297_v47, %v287_v40 }
 0x268   :  { %293 = vadd.xlane.f32.xlu1 %v291_v44  ;;  %v290_v45 = vsub.f32 %v275_v38, %v288_v43  ;;  %v298_v48 = vmul.f32 96.0, %v288_v43 }
 0x26a   :  { %v292_v46 = vmul.f32 %v290_v45, %v290_v45  ;;  %v300_v53 = vmul.f32 %v298_v48, %v288_v43 }
 0x26c   :  { %295 = vadd.xlane.f32.xlu1 %v292_v46 }
 0x2f5   :  { %v294_v50 = vpop.xlane.xlu1 %293 }
 0x2f6   :  { %v301_v51 = vsub.f32 %v294_v50, %v299_v49 }
 0x2f8   :  { %v303_v52 = vmul.f32 0.03125, %v301_v51 }
 0x2f9   :  { %v296_v54 = vpop.xlane.xlu1 %295 }
 0x2fa   :  { %v305_v55 = vadd.f32 1e-05, %v303_v52  ;;  %v302_v56 = vsub.f32 %v296_v54, %v300_v53 }
 0x2fc   :  { %434 = vrsqrt.f32 %v305_v55  ;;  %v304_v57 = vmul.f32 0.03125, %v302_v56 }
 0x2fe   :  { %v306_v58 = vadd.f32 1e-05, %v304_v57 }
 0x300   :  { %436 = vrsqrt.f32 %v306_v58 }
 0x306   :  { %v435_v59 = vpop.eup %434 }
 0x307   :  { %v309_v61 = vmul.f32 %v435_v59, %v289_v41 }
 0x309   :  { %v318_v63 = vmul.f32 %v354_v60, %v309_v61 }
 0x30a   :  { %v437_v0 = vpop.eup %436 }
 0x30b   :  { %v327_v1 = vadd.f32 %v355_v62, %v318_v63  ;;  %v310_v2 = vmul.f32 %v437_v0, %v290_v45 }
 0x30d   :  { %329 = vst [vmem:[%s556_s7] sm:$0xff] %v327_v1  ;;  %v319_v3 = vmul.f32 %v354_v60, %v310_v2 }
 0x30f   :  { %v328_v4 = vadd.f32 %v355_v62, %v319_v3 }
 0x311   :  { %330 = vst [vmem:[%s556_s7 + $0x8] sm:$0xff] %v328_v4 }

</bundles_post_ra>
